<compile_context>
chip_gen: v7x
topology: tpu7x:2x2x1
jax: 0.10.0
libtpu: 0.0.40
codegen_flags: <defaults>
</compile_context>

<pallas_src>
import functools

import jax
import jax.numpy as jnp
from jax import lax
from jax.experimental import pallas as pl
from jax.experimental.pallas import tpu as pltpu


def _pick_chunk_rows(block_rows, target=256):
    """Largest divisor of block_rows that is a multiple of 8 and <= target."""
    if block_rows % 8 != 0 or block_rows <= target:
        return block_rows
    for c in range(target, 7, -8):
        if block_rows % c == 0:
            return c
    return block_rows


def _dice_kernel(*refs, has_weights, block_rows, chunk_rows, acc_rows, lanes,
                 rows_total, need_row_mask):
    if has_weights:
        pred_ref, gt_ref, mask_ref, w_ref = refs[:4]
        inter_ref, psum_ref, gsum_ref = refs[4:]
    else:
        pred_ref, gt_ref, mask_ref = refs[:3]
        w_ref = None
        inter_ref, psum_ref, gsum_ref = refs[3:]

    i = pl.program_id(0)
    nchunks = block_rows // chunk_rows
    fold_groups = chunk_rows // acc_rows

    def fold(x):
        # Fold the row axis in groups of `acc_rows` sublanes: reduction over the
        # leading (untiled) axis -> pure VPU adds, no cross-lane traffic.
        if fold_groups == 1:
            return x
        return jnp.sum(x.reshape(fold_groups, acc_rows, lanes), axis=0)

    def chunk_sums(c, mask_rows):
        if nchunks == 1:
            r0 = 0
            read = lambda ref: ref[...]
        else:
            r0 = pl.multiple_of(c * chunk_rows, chunk_rows)
            read = lambda ref: ref[pl.ds(r0, chunk_rows), :]

        # Upcast in-register (inputs may be bf16 / int / bool); accumulate in f32.
        p = read(pred_ref).astype(jnp.float32)
        g = read(gt_ref).astype(jnp.float32)
        m = read(mask_ref).astype(jnp.float32)
        if w_ref is not None:
            m = m * read(w_ref).astype(jnp.float32)   # fused weights * mask

        if mask_rows:
            # Last block may be partially out of bounds; its VMEM tail is
            # unspecified, so zero it with a select keyed on the logical row id
            # (select, not multiply, so garbage/NaN tail data is safe).
            row_ids = (lax.broadcasted_iota(jnp.int32, (chunk_rows, 1), 0)
                       + i * block_rows + r0)
            valid = row_ids < rows_total
            p = jnp.where(valid, p, 0.0)
            g = jnp.where(valid, g, 0.0)
            m = jnp.where(valid, m, 0.0)

        pm = p * m
        gm = g * m
        return fold(pm * g), fold(pm), fold(gm)

    def block_sums(mask_rows):
        if nchunks == 1:
            return chunk_sums(0, mask_rows)
        zeros = jnp.zeros((acc_rows, lanes), jnp.float32)

        def body(c, carry):
            ai, ap, ag = carry
            di, dp, dg = chunk_sums(c, mask_rows)
            return ai + di, ap + dp, ag + dg

        return lax.fori_loop(0, nchunks, body, (zeros, zeros, zeros))

    def write(vals):
        si, sp, sg = vals
        inter_ref[...] = si
        psum_ref[...] = sp
        gsum_ref[...] = sg

    if need_row_mask:
        last = pl.num_programs(0) - 1

        @pl.when(i != last)
        def _full_blocks():
            write(block_sums(False))

        @pl.when(i == last)
        def _ragged_block():
            write(block_sums(True))
    else:
        write(block_sums(False))


def dice_loss(pred, gt, mask, weights=None, eps=1e-6, *,
              lanes=None, block_rows=None, chunk_rows=None):
    # Preamble matching the PyTorch module's _compute().
    if pred.ndim == 4:
        pred = pred[:, 0, :, :]
        gt = gt[:, 0, :, :]
    assert pred.shape == gt.shape
    assert pred.shape == mask.shape
    if weights is not None:
        assert weights.shape == mask.shape

    eps = float(eps)
    total = int(pred.size)
    has_weights = weights is not None

    flats = [pred.reshape(-1), gt.reshape(-1), mask.reshape(-1)]
    if has_weights:
        flats.append(weights.reshape(-1))

    # ---- Lane selection: largest multiple of 128 dividing the element count. ----
    def pick_lanes(n):
        for cand in range(1024, 127, -128):
            if n % cand == 0:
                return cand
        return None

    if lanes is None:
        lanes_sel = pick_lanes(total)
    else:
        assert lanes % 128 == 0
        lanes_sel = lanes if total % lanes == 0 else None

    tail_inter = tail_p = tail_g = jnp.float32(0.0)
    if lanes_sel is None:
        # Ragged element count: stream the 128-aligned prefix through the kernel
        # and add the (<128-element) remainder in plain JAX.
        # TODO(synk): the prefix slice may still materialize a copy in XLA;
        # choosing H*W to be a multiple of 128 upstream avoids it entirely.
        base = lanes if lanes is not None else 128
        main = (total // base) * base
        tails = [f[main:] for f in flats]
        tp = tails[0].astype(jnp.float32)
        tg = tails[1].astype(jnp.float32)
        tm = tails[2].astype(jnp.float32)
        if has_weights:
            tm = tm * tails[3].astype(jnp.float32)
        tail_inter = jnp.sum(tp * tg * tm)
        tail_p = jnp.sum(tp * tm)
        tail_g = jnp.sum(tg * tm)
        if main == 0:
            union = tail_p + tail_g + eps
            return 1.0 - 2.0 * tail_inter / union
        flats = [f[:main] for f in flats]
        total = main
        lanes_sel = lanes if lanes is not None else pick_lanes(main)

    rows = total // lanes_sel
    views = [f.reshape(rows, lanes_sel) for f in flats]

    # ---- Block sizing: dtype-scaled, double-buffered streamed set <= ~28 MiB. ----
    streamed_bytes = sum(v.dtype.itemsize for v in views)
    elems_budget = max((28 * 1024 * 1024) // (2 * streamed_bytes), 8 * lanes_sel)
    rows_budget = max(256, (elems_budget // lanes_sel) // 256 * 256)

    if block_rows is None:
        if rows <= rows_budget and (rows % 8 == 0 or rows < 8):
            block_rows_sel = rows                       # single full block
        else:
            block_rows_sel = min(rows_budget, (rows // 8) * 8)
    else:
        block_rows_sel = min(block_rows, rows)

    grid_rows = (rows + block_rows_sel - 1) // block_rows_sel
    need_row_mask = (rows % block_rows_sel) != 0

    if chunk_rows is None:
        chunk_rows_sel = _pick_chunk_rows(block_rows_sel)
    else:
        assert block_rows_sel % chunk_rows == 0
        chunk_rows_sel = chunk_rows
    acc_rows = 8 if chunk_rows_sel % 8 == 0 else chunk_rows_sel

    kernel = functools.partial(
        _dice_kernel,
        has_weights=has_weights,
        block_rows=block_rows_sel,
        chunk_rows=chunk_rows_sel,
        acc_rows=acc_rows,
        lanes=lanes_sel,
        rows_total=rows,
        need_row_mask=need_row_mask,
    )

    in_spec = pl.BlockSpec((block_rows_sel, lanes_sel), lambda i: (i, 0))
    out_spec = pl.BlockSpec((acc_rows, lanes_sel), lambda i: (i, 0))
    out_shape = jax.ShapeDtypeStruct((grid_rows * acc_rows, lanes_sel), jnp.float32)

    part_i, part_p, part_g = pl.pallas_call(
        kernel,
        out_shape=(out_shape, out_shape, out_shape),
        grid=(grid_rows,),
        in_specs=[in_spec] * len(views),
        out_specs=(out_spec, out_spec, out_spec),
        compiler_params=pltpu.CompilerParams(
            # Independent per-program partials -> safe to shard across cores.
            dimension_semantics=("parallel",),
            # ~28 MiB streamed (double-buffered) + ~5 MiB chunk intermediates.
            vmem_limit_bytes=48 * 1024 * 1024,
        ),
    )(*views)

    intersection = jnp.sum(part_i) + tail_inter
    union = jnp.sum(part_p) + jnp.sum(part_g) + tail_p + tail_g + eps
    # TODO(synk): the PyTorch `assert loss <= 1` is a host-side check; not emitted in-kernel.
    return 1.0 - 2.0 * intersection / union


if __name__ == "__main__":
    key = jax.random.PRNGKey(0)

    def reference(pred, gt, mask, weights=None, eps=1e-6):
        if pred.ndim == 4:
            pred = pred[:, 0, :, :]
            gt = gt[:, 0, :, :]
        if weights is not None:
            mask = weights * mask
        p = pred.astype(jnp.float32)
        g = gt.astype(jnp.float32)
        m = mask.astype(jnp.float32)
        inter = jnp.sum(p * g * m)
        union = jnp.sum(p * m) + jnp.sum(g * m) + eps
        return 1.0 - 2.0 * inter / union

    # Test 1: canonical module shapes (N, 1, H, W), f32, no weights, auto tiling.
    k1, k2, k3, key = jax.random.split(key, 4)
    N, C, H, W = 2, 1, 16, 16
    pred = jax.nn.sigmoid(jax.random.normal(k1, (N, C, H, W), dtype=jnp.float32))
    gt = (jax.random.uniform(k2, (N, C, H, W)) > 0.5).astype(jnp.float32)
    mask = (jax.random.uniform(k3, (N, H, W)) > 0.2).astype(jnp.float32)
    loss = jax.block_until_ready(dice_loss(pred, gt, mask))
    ref = reference(pred, gt, mask)
    assert jnp.allclose(loss, ref, atol=1e-5), (loss, ref)
    assert float(loss) <= 1.0

    # Test 2: fused weights + element count (960) not a multiple of 128
    #         -> kernel on the 128-aligned prefix, tiny tail in plain JAX.
    k1, k2, k3, k4, key = jax.random.split(key, 5)
    N, H, W = 1, 24, 40
    pred = jax.nn.sigmoid(jax.random.normal(k1, (N, 1, H, W), dtype=jnp.float32))
    gt = (jax.random.uniform(k2, (N, 1, H, W)) > 0.5).astype(jnp.float32)
    mask = (jax.random.uniform(k3, (N, H, W)) > 0.2).astype(jnp.float32)
    weights = jax.random.uniform(k4, (N, H, W), dtype=jnp.float32)
    loss = jax.block_until_ready(dice_loss(pred, gt, mask, weights=weights))
    ref = reference(pred, gt, mask, weights=weights)
    assert jnp.allclose(loss, ref, atol=1e-5), (loss, ref)

    # Test 3: bf16 inputs, forced multi-block grid with a ragged masked last
    #         block and the 8-sublane fold path.
    k1, k2, k3, key = jax.random.split(key, 4)
    N, H, W = 2, 48, 40   # total = 3840 -> rows = 30 at lanes=128
    pred = jax.nn.sigmoid(jax.random.normal(k1, (N, 1, H, W))).astype(jnp.bfloat16)
    gt = (jax.random.uniform(k2, (N, 1, H, W)) > 0.5).astype(jnp.bfloat16)
    mask = (jax.random.uniform(k3, (N, H, W)) > 0.2).astype(jnp.bfloat16)
    loss = jax.block_until_ready(dice_loss(pred, gt, mask, lanes=128, block_rows=16))
    ref = reference(pred, gt, mask)
    assert jnp.allclose(loss, ref, atol=1e-4), (loss, ref)

    # Test 4: forced in-block chunk loop (fori_loop) path, exact multi-block grid.
    k1, k2, k3, key = jax.random.split(key, 4)
    N, H, W = 1, 64, 64   # total = 4096 -> rows = 32 at lanes=128
    pred = jax.nn.sigmoid(jax.random.normal(k1, (N, 1, H, W), dtype=jnp.float32))
    gt = (jax.random.uniform(k2, (N, 1, H, W)) > 0.5).astype(jnp.float32)
    mask = (jax.random.uniform(k3, (N, H, W)) > 0.2).astype(jnp.float32)
    loss = jax.block_until_ready(
        dice_loss(pred, gt, mask, lanes=128, block_rows=16, chunk_rows=8))
    ref = reference(pred, gt, mask)
    assert jnp.allclose(loss, ref, atol=1e-5), (loss, ref)

    print("KERNEL_OK")
</pallas_src>

<mosaic_0001>
module attributes {stable_mosaic.version = 11 : i64} {
  func.func @_dice_kernel(%arg0: i32, %arg1: memref<1x512xf32, #tpu.memory_space<vmem>>, %arg2: memref<1x512xf32, #tpu.memory_space<vmem>>, %arg3: memref<1x512xf32, #tpu.memory_space<vmem>>, %arg4: memref<1x512xf32, #tpu.memory_space<vmem>>, %arg5: memref<1x512xf32, #tpu.memory_space<vmem>>, %arg6: memref<1x512xf32, #tpu.memory_space<vmem>>) attributes {dimension_semantics = [#tpu.dimension_semantics<parallel>], iteration_bounds = array<i64: 1>, scalar_prefetch = 0 : i64, scratch_operands = 0 : i64, tpu.core_type = #tpu.core_type<tc>, window_params = [{transform_indices = @transform_0, window_bounds = array<i64: 1, 512>}, {transform_indices = @transform_1, window_bounds = array<i64: 1, 512>}, {transform_indices = @transform_2, window_bounds = array<i64: 1, 512>}, {transform_indices = @transform_3, window_bounds = array<i64: 1, 512>}, {transform_indices = @transform_4, window_bounds = array<i64: 1, 512>}, {transform_indices = @transform_5, window_bounds = array<i64: 1, 512>}]} {
    %c0 = arith.constant 0 : index
    %c0_0 = arith.constant 0 : index
    %0 = vector.load %arg1[%c0, %c0_0] : memref<1x512xf32, #tpu.memory_space<vmem>>, vector<1x512xf32>
    %c0_1 = arith.constant 0 : index
    %c0_2 = arith.constant 0 : index
    %1 = vector.load %arg2[%c0_1, %c0_2] : memref<1x512xf32, #tpu.memory_space<vmem>>, vector<1x512xf32>
    %c0_3 = arith.constant 0 : index
    %c0_4 = arith.constant 0 : index
    %2 = vector.load %arg3[%c0_3, %c0_4] : memref<1x512xf32, #tpu.memory_space<vmem>>, vector<1x512xf32>
    %3 = arith.mulf %0, %2 : vector<1x512xf32>
    %4 = arith.mulf %1, %2 : vector<1x512xf32>
    %5 = arith.mulf %3, %1 : vector<1x512xf32>
    %c0_5 = arith.constant 0 : index
    %c0_6 = arith.constant 0 : index
    %6 = vector.load %arg4[%c0_5, %c0_6] : memref<1x512xf32, #tpu.memory_space<vmem>>, vector<1x512xf32>
    tpu.vector_store %arg4[%c0_5, %c0_6], %5 {strides = array<i32>} : memref<1x512xf32, #tpu.memory_space<vmem>>, vector<1x512xf32>,
    %c0_7 = arith.constant 0 : index
    %c0_8 = arith.constant 0 : index
    %7 = vector.load %arg5[%c0_7, %c0_8] : memref<1x512xf32, #tpu.memory_space<vmem>>, vector<1x512xf32>
    tpu.vector_store %arg5[%c0_7, %c0_8], %3 {strides = array<i32>} : memref<1x512xf32, #tpu.memory_space<vmem>>, vector<1x512xf32>,
    %c0_9 = arith.constant 0 : index
    %c0_10 = arith.constant 0 : index
    %8 = vector.load %arg6[%c0_9, %c0_10] : memref<1x512xf32, #tpu.memory_space<vmem>>, vector<1x512xf32>
    tpu.vector_store %arg6[%c0_9, %c0_10], %4 {strides = array<i32>} : memref<1x512xf32, #tpu.memory_space<vmem>>, vector<1x512xf32>,
    return
  }
  func.func @transform_0(%arg0: i32) -> (i32, i32) {
    %c0_i32 = arith.constant 0 : i32
    %c0_i32_0 = arith.constant 0 : i32
    return %arg0, %c0_i32 : i32, i32
  }
  func.func @transform_1(%arg0: i32) -> (i32, i32) {
    %c0_i32 = arith.constant 0 : i32
    %c0_i32_0 = arith.constant 0 : i32
    return %arg0, %c0_i32 : i32, i32
  }
  func.func @transform_2(%arg0: i32) -> (i32, i32) {
    %c0_i32 = arith.constant 0 : i32
    %c0_i32_0 = arith.constant 0 : i32
    return %arg0, %c0_i32 : i32, i32
  }
  func.func @transform_3(%arg0: i32) -> (i32, i32) {
    %c0_i32 = arith.constant 0 : i32
    %c0_i32_0 = arith.constant 0 : i32
    return %arg0, %c0_i32 : i32, i32
  }
  func.func @transform_4(%arg0: i32) -> (i32, i32) {
    %c0_i32 = arith.constant 0 : i32
    %c0_i32_0 = arith.constant 0 : i32
    return %arg0, %c0_i32 : i32, i32
  }
  func.func @transform_5(%arg0: i32) -> (i32, i32) {
    %c0_i32 = arith.constant 0 : i32
    %c0_i32_0 = arith.constant 0 : i32
    return %arg0, %c0_i32 : i32, i32
  }
}

</mosaic_0001>

<bundles_post_ra>
// kernel: tpu_custom_call.1
= control target key start
LH: loop header
LB: loop body
LE: loop exit
PB: predicated region body
PF: predicated region fallthrough
CT: control target
= control target key end

     0   :  { %11 = vsyncpa [#allocation3], 0  ;;  %s344_s0 = inlined_call_operand.hbm [shape: f32[1,512], index: 0, kind: input, shape index: {}]   ;;  %s345_s1 = inlined_call_operand.hbm [shape: f32[1,512], index: 1, kind: input, shape index: {}]   ;;  %s346_s2 = inlined_call_operand.vmem [shape: f32[1,512], index: 2, kind: input, shape index: {}]   ;;  %s347_s3 = inlined_call_operand.hbm [shape: f32[1,512], index: 3, kind: output, shape index: {0}]   ;;  %s348_s4 = inlined_call_operand.hbm [shape: f32[1,512], index: 4, kind: output, shape index: {1}]   ;;  %s349_s5 = inlined_call_operand.hbm [shape: f32[1,512], index: 5, kind: output, shape index: {2}]  }
   0x1   :  { %12 = vsyncpa [#allocation6], 0 }
   0x2   :  { %13 = vsyncpa [#allocation4], 0 }
   0x3   :  { %14 = vsyncpa [#allocation9], 0  ;;  %s222_s18 = smov [#allocation2]   ;;  %s223_s20 = smov [#allocation5]  }
   0x4   :  { %s21_s19 = sshll.u32 %s222_s18, 4  ;;  %s31_s21 = sshll.u32 %s223_s20, 4  ;;  %s22_s19 = int_to_ptr.vmem [resolvable:$true] %s21_s19  ;;  %s32_s21 = int_to_ptr.vmem [resolvable:$true] %s31_s21 }
   0x5   :  { %s104_s24 = scalar_lea.hbm %s344_s0, 64 }
   0x6   :  { %p105_p0 = scmp.ne.s32.totalorder %s344_s0, %s104_s24  ;;  %p108_p1 = scmp.lt.u32.totalorder %s104_s24, %s344_s0 }
   0x8   :  { %p110_p2 = pnand %p108_p1, %p105_p0 }
   0xa   :  { %113 = shalt.err (!%p110_p2)
}
   0xb   :  { %s114_s29 = scalar_lea.vmem %s22_s19, 64  ;;  %p119_p4 = scmp.lt.s32.totalorder %s22_s19, %s22_s19 }
   0xc   :  { %p115_p3 = scmp.ne.s32.totalorder %s22_s19, %s114_s29  ;;  %p120_p5 = scmp.lt.s32.totalorder %s114_s29, %s114_s29 }
   0xe   :  { %p121_p6 = por %p120_p5, %p119_p4 }
  0x10   :  { %p122_p7 = pnand %p121_p6, %p115_p3 }
  0x12   :  { %125 = shalt.err (!%p122_p7)
}
  0x13   :  { %24 = dma.hbm_to_vmem [thread:$0]  %s344_s0, 64, %s22_s19, [#allocation3]  }
  0x14   :  { %s126_s9 = scalar_lea.hbm %s345_s1, 64 }
  0x15   :  { %p127_p8 = scmp.ne.s32.totalorder %s345_s1, %s126_s9  ;;  %p130_p9 = scmp.lt.u32.totalorder %s126_s9, %s345_s1 }
  0x17   :  { %p132_p10 = pnand %p130_p9, %p127_p8 }
  0x19   :  { %135 = shalt.err (!%p132_p10)
}
  0x1a   :  { %s136_s14 = scalar_lea.vmem %s32_s21, 64  ;;  %p141_p12 = scmp.lt.s32.totalorder %s32_s21, %s32_s21 }
  0x1b   :  { %p137_p11 = scmp.ne.s32.totalorder %s32_s21, %s136_s14  ;;  %p142_p13 = scmp.lt.s32.totalorder %s136_s14, %s136_s14 }
  0x1d   :  { %p143_p0 = por %p142_p13, %p141_p12 }
  0x1f   :  { %p144_p1 = pnand %p143_p0, %p137_p11 }
  0x21   :  { %147 = shalt.err (!%p144_p1)
}
  0x22   :  { %34 = dma.hbm_to_vmem [thread:$0]  %s345_s1, 64, %s32_s21, [#allocation6]  }
  0x23   :  { %214 = dma.done.wait [#allocation3], 64  }
  0x24   :  { %215 = vsyncadd [#allocation3], 4294967232 }
  0x25   :  { %216 = dma.done.wait [#allocation6], 64  }
  0x26   :  { %217 = vsyncadd [#allocation6], 4294967232  ;;  %v49_v0 = vlaneseq  ;;  %s224_s16 = smov [#allocation8]   ;;  %s225_s18 = smov [#allocation7]   ;;  %v43_v2 = vld [vmem:[#allocation2] sm:$0xf] }
  0x27   :  { %s72_s17 = sshll.u32 %s224_s16, 4  ;;  %s62_s19 = sshll.u32 %s225_s18, 4  ;;  %v45_v3 = vld [vmem:[%s346_s2] sm:$0xf]  ;;  %v44_v4 = vld [vmem:[#allocation5] sm:$0xf]  ;;  %s73_s17 = int_to_ptr.vmem [resolvable:$true] %s72_s17  ;;  %s294_s19 = int_to_ptr.vmem [resolvable:$true] %s62_s19 }
  0x28   :  { %vm281_vm0 = vcmp.lt.s32.totalorder %v49_v0, 512  ;;  %s226_s20 = smov [#allocation10]   ;;  %v46_v5 = vmul.f32 %v45_v3, %v43_v2  ;;  %v47_v6 = vmul.f32 %v45_v3, %v44_v4  ;;  %s148_s1 = scalar_lea.vmem %s73_s17, 64 }
  0x29   :  { %s82_s22 = sshll.u32 %s226_s20, 4  ;;  %p149_p2 = scmp.ne.s32.totalorder %s73_s17, %s148_s1  ;;  %s288_s22 = int_to_ptr.vmem [resolvable:$true] %s82_s22 }
  0x2a   :  { %54 = vst.msk [vmem:[#allocation8] sm:$0xf] %vm281_vm0, %v46_v5  ;;  %v48_v7 = vmul.f32 %v46_v5, %v44_v4  ;;  %55 = vst.msk [vmem:[#allocation10] sm:$0xf] %vm281_vm0, %v47_v6  ;;  %p153_p3 = scmp.lt.s32.totalorder %s73_s17, %s73_s17  ;;  %p154_p4 = scmp.lt.s32.totalorder %s148_s1, %s148_s1 }
  0x2c   :  { %p155_p5 = por %p154_p4, %p153_p3 }
  0x2e   :  { %p156_p6 = pnand %p155_p5, %p149_p2 }
  0x30   :  { %159 = shalt.err (!%p156_p6)
}
  0x31   :  { %s160_s25 = scalar_lea.hbm %s348_s4, 64 }
  0x32   :  { %p161_p7 = scmp.ne.s32.totalorder %s348_s4, %s160_s25  ;;  %p164_p8 = scmp.lt.u32.totalorder %s160_s25, %s348_s4 }
  0x34   :  { %p166_p9 = pnand %p164_p8, %p161_p7 }
  0x36   :  { %169 = shalt.err (!%p166_p9)
}
  0x37   :  { %75 = dma.vmem_to_hbm [thread:$0]  %s73_s17, 64, %s348_s4, [#allocation9]   ;;  %53 = vst.msk [vmem:[#allocation7] sm:$0xf] %vm281_vm0, %v48_v7 }
  0x38   :  { %s170_s7 = scalar_lea.vmem %s288_s22, 64  ;;  %p175_p11 = scmp.lt.s32.totalorder %s288_s22, %s288_s22 }
  0x39   :  { %p171_p10 = scmp.ne.s32.totalorder %s288_s22, %s170_s7  ;;  %p176_p12 = scmp.lt.s32.totalorder %s170_s7, %s170_s7 }
  0x3b   :  { %p177_p13 = por %p176_p12, %p175_p11 }
  0x3d   :  { %p178_p0 = pnand %p177_p13, %p171_p10 }
  0x3f   :  { %181 = shalt.err (!%p178_p0)
}
  0x40   :  { %s182_s10 = scalar_lea.hbm %s349_s5, 64 }
  0x41   :  { %p183_p1 = scmp.ne.s32.totalorder %s349_s5, %s182_s10  ;;  %p186_p2 = scmp.lt.u32.totalorder %s182_s10, %s349_s5 }
  0x43   :  { %p188_p3 = pnand %p186_p2, %p183_p1 }
  0x45   :  { %191 = shalt.err (!%p188_p3)
}
  0x46   :  { %85 = dma.vmem_to_hbm [thread:$0]  %s288_s22, 64, %s349_s5, [#allocation9]  }
  0x47   :  { %s192_s15 = scalar_lea.vmem %s294_s19, 64  ;;  %p197_p5 = scmp.lt.s32.totalorder %s294_s19, %s294_s19 }
  0x48   :  { %p193_p4 = scmp.ne.s32.totalorder %s294_s19, %s192_s15  ;;  %p198_p6 = scmp.lt.s32.totalorder %s192_s15, %s192_s15 }
  0x4a   :  { %p199_p7 = por %p198_p6, %p197_p5 }
  0x4c   :  { %p200_p8 = pnand %p199_p7, %p193_p4 }
  0x4e   :  { %203 = shalt.err (!%p200_p8)
}
  0x4f   :  { %s204_s18 = scalar_lea.hbm %s347_s3, 64 }
  0x50   :  { %p205_p9 = scmp.ne.s32.totalorder %s347_s3, %s204_s18  ;;  %p208_p10 = scmp.lt.u32.totalorder %s204_s18, %s347_s3 }
  0x52   :  { %p210_p11 = pnand %p208_p10, %p205_p9 }
  0x54   :  { %213 = shalt.err (!%p210_p11)
}
  0x55   :  { %65 = dma.vmem_to_hbm [thread:$0]  %s294_s19, 64, %s347_s3, [#allocation4]  }
  0x56   :  { %218 = dma.done.wait [#allocation4], 64  }
  0x57   :  { %219 = vsyncadd [#allocation4], 4294967232 }
  0x58   :  { %220 = dma.done.wait [#allocation9], 128  }
  0x59   :  { %221 = vsyncadd [#allocation9], 4294967168 }
  0x5a   :  { %95 = vsyncpa [#allocation3], 1 }
  0x5b   :  { %96 = vsyncpa [#allocation6], 1 }
  0x5c   :  { %97 = vsyncpa [#allocation4], 1 }
  0x5d   :  { %98 = vsyncpa [#allocation9], 1 }

</bundles_post_ra>
